<compile_context>
chip_gen: v7x
topology: tpu7x:2x2x1
jax: 0.10.0
libtpu: 0.0.40
codegen_flags: <defaults>
</compile_context>

<pallas_src>
import jax
import jax.numpy as jnp
from jax import lax
from jax.experimental import pallas as pl


# ---------------- single step (exactly the PyTorch forward) -----------------

def _update_fast_state_kernel(x_ref, w_ref, b_ref, o_ref):
    # Single fused matmul over the concatenated features (K = 72, one MXU tile).
    acc = jnp.dot(x_ref[...], w_ref[...], preferred_element_type=jnp.float32)
    acc = acc + b_ref[...]                       # (1, out) broadcasts over batch
    o_ref[...] = jnp.maximum(acc, 0.0).astype(o_ref.dtype)


def update_fast_state(fast_state, current_input, reasoned_state_z0, weight, bias):
    """weight: (input_dims, fast_state_dims) = W.T ; bias: (fast_state_dims,)."""
    # Glue: mimic the torch 1-D -> 2-D unsqueeze.
    if fast_state.ndim == 1:
        fast_state = fast_state[None, :]
    if current_input.ndim == 1:
        current_input = current_input[None, :]
    if reasoned_state_z0.ndim == 1:
        reasoned_state_z0 = reasoned_state_z0[None, :]

    # Concat hoisted to the wrapper: one activation DMA into the kernel
    # instead of three, and a single full-weight DMA (no column slices).
    combined = jnp.concatenate(
        [fast_state, current_input, reasoned_state_z0], axis=-1)
    b, d_in = combined.shape
    d_out = weight.shape[1]
    bias2d = bias.reshape(1, d_out)

    full = lambda shape: pl.BlockSpec(shape, lambda: tuple(0 for _ in shape))
    # grid=(): single launch, everything VMEM resident.  When batch grows,
    # switch to a ("parallel",) grid over >=128-row M tiles for MXU fill and
    # v7x dual-TC sharding, and present the output lane-dense.
    return pl.pallas_call(
        _update_fast_state_kernel,
        out_shape=jax.ShapeDtypeStruct((b, d_out), fast_state.dtype),
        grid=(),
        in_specs=[full((b, d_in)), full((d_in, d_out)), full((1, d_out))],
        out_specs=full((b, d_out)),
    )(combined, weight, bias2d)


# -------------------- fused recurrent multi-step variant ---------------------
# fast_state_{t+1} = relu([fast_state_t, ci_t, rz_t] @ W + b)
#                  = relu(fast_state_t @ W_fs + drive_t),
# where drive_t = [ci_t, rz_t] @ W_cr + b is input-only and is hoisted out of
# the sequential recurrence into one batched matmul over all T steps.

def _scan_kernel(fs0_ref, drive_ref, w_ref, o_ref):
    T = drive_ref.shape[0]                     # static at trace time
    w = w_ref[...]                             # (d_fs, d_fs), VMEM resident
    fs0 = fs0_ref[...].astype(jnp.float32)

    def step(t, fs):
        new = jnp.dot(fs, w, preferred_element_type=jnp.float32) + drive_ref[t]
        new = jnp.maximum(new, 0.0)
        o_ref[t] = new.astype(o_ref.dtype)     # VMEM store; HBM writeback once
        return new

    # Fully unrolled in-kernel recurrence: no per-step grid/pipeline overhead,
    # indices become static, carried state stays in vregs.
    lax.fori_loop(0, T, step, fs0, unroll=True)


def update_fast_state_scan(fast_state0, current_input_seq, reasoned_state_z0_seq,
                           weight, bias):
    """Run T recurrent UpdateFastState steps inside a single pallas_call.

    fast_state0: (B, d_fs); *_seq: (T, B, d_*); weight: (d_in, d_fs); bias: (d_fs,)
    Returns all T fast states, shape (T, B, d_fs).
    """
    T, B, _ = current_input_seq.shape
    d_fs = fast_state0.shape[-1]

    w_fs = weight[:d_fs, :]                # recurrent part, resident in VMEM
    w_cr = weight[d_fs:, :]                # input part, consumed by hoisted matmul
    drive = (jnp.concatenate([current_input_seq, reasoned_state_z0_seq], axis=-1)
             @ w_cr + bias).astype(jnp.float32)          # (T, B, d_fs)

    full = lambda shape: pl.BlockSpec(shape, lambda: tuple(0 for _ in shape))
    return pl.pallas_call(
        _scan_kernel,
        out_shape=jax.ShapeDtypeStruct((T, B, d_fs), fast_state0.dtype),
        grid=(),
        in_specs=[full((B, d_fs)),          # fs0
                  full((T, B, d_fs)),       # drive (whole sequence resident)
                  full((d_fs, d_fs))],      # W_fs
        out_specs=full((T, B, d_fs)),       # bulk writeback at kernel end
    )(fast_state0, drive, w_fs)


if __name__ == "__main__":
    # Module dims
    fast_state_dims = 32
    current_input_dims = 16
    reasoned_state_z0_dims = 24
    input_dims = fast_state_dims + current_input_dims + reasoned_state_z0_dims
    batch = 2
    steps = 8

    key = jax.random.PRNGKey(0)
    k_fs, k_ci, k_rz, k_w, k_b, k_cis, k_rzs = jax.random.split(key, 7)

    fast_state = jax.random.normal(k_fs, (batch, fast_state_dims), dtype=jnp.float32)
    current_input = jax.random.normal(k_ci, (batch, current_input_dims), dtype=jnp.float32)
    reasoned_state_z0 = jax.random.normal(k_rz, (batch, reasoned_state_z0_dims), dtype=jnp.float32)

    # Linear params stored as (in, out) = W.T
    bound = 1.0 / (input_dims ** 0.5)
    weight = jax.random.uniform(k_w, (input_dims, fast_state_dims),
                                minval=-bound, maxval=bound, dtype=jnp.float32)
    bias = jax.random.uniform(k_b, (fast_state_dims,),
                              minval=-bound, maxval=bound, dtype=jnp.float32)

    # ---- single-step forward (matches the PyTorch module) ----
    out = update_fast_state(fast_state, current_input, reasoned_state_z0, weight, bias)
    out = jax.block_until_ready(out)

    combined = jnp.concatenate([fast_state, current_input, reasoned_state_z0], axis=-1)
    ref = jnp.maximum(combined @ weight + bias, 0.0)
    assert out.shape == (batch, fast_state_dims)
    assert jnp.allclose(out, ref, atol=1e-5, rtol=1e-5)

    # ---- fused multi-step recurrence (single launch, in-kernel loop) ----
    ci_seq = jax.random.normal(k_cis, (steps, batch, current_input_dims), dtype=jnp.float32)
    rz_seq = jax.random.normal(k_rzs, (steps, batch, reasoned_state_z0_dims), dtype=jnp.float32)

    outs = update_fast_state_scan(fast_state, ci_seq, rz_seq, weight, bias)
    outs = jax.block_until_ready(outs)

    def ref_step(fs, inputs):
        ci, rz = inputs
        comb = jnp.concatenate([fs, ci, rz], axis=-1)
        new = jnp.maximum(comb @ weight + bias, 0.0)
        return new, new

    _, ref_seq = jax.lax.scan(ref_step, fast_state, (ci_seq, rz_seq))
    assert outs.shape == (steps, batch, fast_state_dims)
    assert jnp.allclose(outs, ref_seq, atol=1e-5, rtol=1e-5)

    print("KERNEL_OK")
</pallas_src>

<mosaic_0001>
module attributes {stable_mosaic.version = 11 : i64} {
  func.func @_update_fast_state_kernel(%arg0: memref<2x72xf32, #tpu.memory_space<vmem>>, %arg1: memref<72x32xf32, #tpu.memory_space<vmem>>, %arg2: memref<1x32xf32, #tpu.memory_space<vmem>>, %arg3: memref<2x32xf32, #tpu.memory_space<vmem>>) attributes {dimension_semantics = [], scalar_prefetch = 0 : i64, scratch_operands = 0 : i64, tpu.core_type = #tpu.core_type<tc>} {
    %c0 = arith.constant 0 : index
    %c0_0 = arith.constant 0 : index
    %0 = vector.load %arg0[%c0, %c0_0] : memref<2x72xf32, #tpu.memory_space<vmem>>, vector<2x72xf32>
    %c0_1 = arith.constant 0 : index
    %c0_2 = arith.constant 0 : index
    %1 = vector.load %arg1[%c0_1, %c0_2] : memref<72x32xf32, #tpu.memory_space<vmem>>, vector<72x32xf32>
    %cst = arith.constant dense<0.000000e+00> : vector<2x32xf32>
    %2 = tpu.matmul %0, %1, %cst {dimension_numbers = #tpu.dot_dimension_numbers<[1], [0], [0], [1], [0, 0, 1, 1], [], []>} : vector<2x72xf32>, vector<72x32xf32>, vector<2x32xf32> -> vector<2x32xf32>
    %c0_3 = arith.constant 0 : index
    %c0_4 = arith.constant 0 : index
    %3 = vector.load %arg2[%c0_3, %c0_4] : memref<1x32xf32, #tpu.memory_space<vmem>>, vector<1x32xf32>
    %4 = vector.broadcast %3 : vector<1x32xf32> to vector<2x32xf32>
    %5 = arith.addf %2, %4 : vector<2x32xf32>
    %cst_5 = arith.constant 0.000000e+00 : f32
    %6 = vector.broadcast %cst_5 : f32 to vector<2x32xf32>
    %7 = arith.maximumf %5, %6 : vector<2x32xf32>
    %c0_6 = arith.constant 0 : index
    %c0_7 = arith.constant 0 : index
    %8 = vector.load %arg3[%c0_6, %c0_7] : memref<2x32xf32, #tpu.memory_space<vmem>>, vector<2x32xf32>
    tpu.vector_store %arg3[%c0_6, %c0_7], %7 {strides = array<i32>} : memref<2x32xf32, #tpu.memory_space<vmem>>, vector<2x32xf32>,
    return
  }
}

</mosaic_0001>

<bundles_post_ra>
// kernel: tpu_custom_call.1
= control target key start
LH: loop header
LB: loop body
LE: loop exit
PB: predicated region body
PF: predicated region fallthrough
CT: control target
= control target key end

     0   :  { %v196_v3 = vmov 0.0|0.0   ;;  %vm197_vm0 = vmmov 0   ;;  %v198_v6 = vmov 0.0   ;;  %s265_s0 = inlined_call_operand.vmem [shape: f32[2,72], index: 0, kind: input, shape index: {}]   ;;  %s266_s1 = inlined_call_operand.vmem [shape: f32[72,32], index: 1, kind: input, shape index: {}]   ;;  %s267_s2 = inlined_call_operand.vmem [shape: f32[1,32], index: 2, kind: input, shape index: {}]   ;;  %s268_s3 = inlined_call_operand.hbm [shape: f32[2,32], index: 3, kind: output, shape index: {}]  }
   0x1   :  { %v16_v0 = vld [vmem:[%s266_s1] sm:$0xff]  ;;  %v17_v1 = vld [vmem:[%s266_s1 + $0x8] sm:$0xff]  ;;  %v18_v2 = vld [vmem:[%s266_s1 + $0x10] sm:$0xff]  ;;  %156 = vmatprep.subr.bf16.mxu0 %v196_v3  ;;  %153 = vmatprep.mubr.msk.f32.mxu0 %vm197_vm0, %v198_v6 }
   0x2   :  { %v157_v4 = vpack.c.bf16 %v17_v1, %v16_v0  ;;  %v19_v5 = vld [vmem:[%s266_s1 + $0x18] sm:$0xff] }
   0x3   :  { %v160_v7 = vpack.c.bf16 %v19_v5, %v18_v2 }
   0x4   :  { %158 = vmatpush3.bf16.msra.mxu0 %v157_v4 }
   0x5   :  { %8 = vsyncpa [#allocation3], 0  ;;  %159 = vmatprep.subr.bf16.mxu0 %v196_v3  ;;  %v20_v8 = vld [vmem:[%s266_s1 + $0x20] sm:$0xff]  ;;  %v21_v9 = vld [vmem:[%s266_s1 + $0x28] sm:$0xff]  ;;  %vm32_vm1 = vcmask 588800   ;;  %s199_s7 = smov [#allocation2]  }
   0x6   :  { %v163_v10 = vpack.c.bf16 %v21_v9, %v20_v8  ;;  %v22_v11 = vld [vmem:[%s266_s1 + $0x30] sm:$0xff]  ;;  %v23_v12 = vld [vmem:[%s266_s1 + $0x38] sm:$0xff]  ;;  %v24_v14 = vld [vmem:[%s266_s1 + $0x40] sm:$0xff]  ;;  %s115_s8 = sshll.u32 %s199_s7, 4  ;;  %vm107_vm2 = vcmask 254976   ;;  %s116_s8 = int_to_ptr.vmem [resolvable:$true] %s115_s8 }
   0x7   :  { %v166_v13 = vpack.c.bf16 %v23_v12, %v22_v11  ;;  %v15_v15 = vld [vmem:[%s265_s0] sm:$0x3]  ;;  %s172_s1 = scalar_lea.vmem %s116_s8, 32  ;;  %p177_p1 = scmp.lt.s32.totalorder %s116_s8, %s116_s8 }
   0x8   :  { %161 = vmatpush3.bf16.msra.mxu0 %v160_v7  ;;  %v123_v16 = vld [vmem:[%s267_s2] ss:$0 sm:$0xff]  ;;  %p173_p0 = scmp.ne.s32.totalorder %s116_s8, %s172_s1  ;;  %p178_p2 = scmp.lt.s32.totalorder %s172_s1, %s172_s1 }
   0x9   :  { %162 = vmatprep.subr.bf16.mxu0 %v196_v3 }
   0xa   :  { %p179_p3 = por %p178_p2, %p177_p1 }
   0xc   :  { %164 = vmatpush3.bf16.msra.mxu0 %v163_v10  ;;  %p180_p4 = pnand %p179_p3, %p173_p0 }
   0xd   :  { %165 = vmatprep.subr.bf16.mxu0 %v196_v3 }
  0x10   :  { %167 = vmatpush3.bf16.msra.mxu0 %v166_v13 }
  0x11   :  { %151 = vmatprep.subr.mxu0 %v198_v6 }
  0x14   :  { %152 = vmatpush3.msra.mxu0 %v24_v14 }
  0x15   :  { %154 = vmatmul.mubr.msk.f32.vlgmr.msra.gmra.mrb[0].mxu0 %vm32_vm1, %v15_v15 }
  0xe8   :  { %v102_v17 = vpop.f32.mrb[0].mxu0 }
  0xe9   :  { %v103_v18 = vadd.f32 %v123_v16, %v102_v17  ;;  %v155_v19 = vpop.f32.mrb[1].mxu0 }
  0xeb   :  { %v106_v20 = vmax.f32 %v103_v18, 0.0 }
  0xed   :  { %108 = vst.msk [vmem:[#allocation2] sm:$0x3] %vm107_vm2, %v106_v20 }
  0xee   :  { %183 = shalt.err (!%p180_p4)
}
  0xef   :  { %s184_s2 = scalar_lea.hbm %s268_s3, 32 }
  0xf0   :  { %p185_p5 = scmp.ne.s32.totalorder %s268_s3, %s184_s2  ;;  %p188_p6 = scmp.lt.u32.totalorder %s184_s2, %s268_s3 }
  0xf2   :  { %p190_p7 = pnand %p188_p6, %p185_p5 }
  0xf4   :  { %193 = shalt.err (!%p190_p7)
}
  0xf5   :  { %118 = dma.vmem_to_hbm [thread:$0]  %s116_s8, 32, %s268_s3, [#allocation3]  }
  0xf6   :  { %194 = dma.done.wait [#allocation3], 32  }
  0xf7   :  { %195 = vsyncadd [#allocation3], 4294967264 }
  0xf8   :  { %122 = vsyncpa [#allocation3], 1 }

</bundles_post_ra>
